<compile_context>
chip_gen: v6e
topology: v6e:2x2x1
jax: 0.10.0
libtpu: 0.0.40
codegen_flags: <defaults>
</compile_context>

<pallas_src>
import jax
import jax.numpy as jnp
import numpy as np
from jax.experimental import pallas as pl
from jax.experimental.pallas import tpu as pltpu


def _round_up(x: int, m: int) -> int:
    return ((x + m - 1) // m) * m


def _sin_decoder_kernel(x_ref, bT_ref, o_ref):
    # x_ref: (tb, K)  bT_ref: (K, N or tn)  o_ref: (tb, N or tn)
    # MXU matmul with f32 accumulation regardless of operand dtype.
    o_ref[...] = jnp.dot(
        x_ref[...], bT_ref[...], preferred_element_type=jnp.float32
    ).astype(o_ref.dtype)


def make_basis_t(out_dim: int = 128, in_dim: int = 128, dtype=jnp.float32):
    """Pre-transposed basis, shape (in_dim, out_dim).

    Torch builds basis[n, k] = sin((n+1) * (k+1)/(out_dim+1) * pi), cropped to
    k < in_dim.  We emit it already transposed so the kernel's MXU output is
    lane-dense over out_dim and no per-call transpose is needed.
    """
    n = jnp.arange(1, out_dim + 1, dtype=jnp.float32)[None, :]         # (1, out_dim)
    k = jnp.arange(1, out_dim + 1, dtype=jnp.float32)[:in_dim, None]   # (in_dim, 1)
    bT = jnp.sin(n * (k / (out_dim + 1)) * jnp.pi)
    return bT.astype(dtype)  # (in_dim, out_dim) == basis.T


def sin_decoder(
    freq_signal: jax.Array,
    basis_t: jax.Array,
    *,
    tb: int = 128,
    mxu_dtype=jnp.bfloat16,
    vmem_budget_bytes: int = 40 * 1024 * 1024,
):
    """freq_signal: (B, in_dim) or (in_dim,); basis_t: (in_dim, out_dim).

    Returns torch-equivalent `matmul(basis, freq_signal.unsqueeze(-1)).squeeze()`.
    """
    orig_ndim = freq_signal.ndim
    if orig_ndim == 1:
        freq_signal = freq_signal[None, :]
    B, K = freq_signal.shape
    K2, N = basis_t.shape
    assert K == K2, f"in_dim mismatch: {K} vs {K2}"
    out_dtype = freq_signal.dtype

    # Cast operands to MXU-native dtype (bf16 on v6e/v7x); accumulation stays f32.
    if mxu_dtype is not None:
        freq_signal = freq_signal.astype(mxu_dtype)
        basis_t = basis_t.astype(mxu_dtype)
    op_bytes = jnp.dtype(freq_signal.dtype).itemsize
    out_bytes = jnp.dtype(out_dtype).itemsize

    # Batch tile: (sublane-)aligned, at most `tb`, ragged B handled by zero-padding.
    granule = 16 if op_bytes < 4 else 8
    tb_eff = max(granule, min(_round_up(tb, granule), _round_up(B, granule)))
    B_pad = _round_up(B, tb_eff)
    if B_pad != B:
        freq_signal = jnp.pad(freq_signal, ((0, B_pad - B), (0, 0)))
    nb = B_pad // tb_eff

    vmem_limit = 64 * 1024 * 1024  # safe on v5e/v6e (128 MiB) and v7x (64 MiB)

    # Conservative VMEM estimate assuming double-buffering of every block.
    resident_bytes = 2 * (K * N + tb_eff * K) * op_bytes + 2 * tb_eff * N * out_bytes

    if resident_bytes <= vmem_budget_bytes:
        # Basis fully VMEM-resident (same block index every step => DMA'd once).
        out = pl.pallas_call(
            _sin_decoder_kernel,
            out_shape=jax.ShapeDtypeStruct((B_pad, N), out_dtype),
            grid_spec=pltpu.PrefetchScalarGridSpec(
                num_scalar_prefetch=0,
                grid=(nb,),
                in_specs=[
                    pl.BlockSpec((tb_eff, K), lambda i: (i, 0)),
                    pl.BlockSpec((K, N), lambda i: (0, 0)),  # resident basis
                ],
                out_specs=pl.BlockSpec((tb_eff, N), lambda i: (i, 0)),
            ),
            compiler_params=pltpu.CompilerParams(
                dimension_semantics=("parallel",),
                vmem_limit_bytes=vmem_limit,
            ),
        )(freq_signal, basis_t)
        return jnp.squeeze(out[:B, :N])

    # Fallback for large bases (e.g. 4096x4096 on v7x's 64 MiB VMEM): tile out_dim
    # so 2*(tb*K + K*tn + tb*tn)*bytes stays inside the budget.
    tn_eff = 512
    while tn_eff > 128 and (
        2 * (tb_eff * K + K * tn_eff) * op_bytes + 2 * tb_eff * tn_eff * out_bytes
    ) > vmem_budget_bytes:
        tn_eff //= 2
    N_pad = _round_up(N, tn_eff)
    if N_pad != N:
        basis_t = jnp.pad(basis_t, ((0, 0), (0, N_pad - N)))

    out = pl.pallas_call(
        _sin_decoder_kernel,
        out_shape=jax.ShapeDtypeStruct((B_pad, N_pad), out_dtype),
        grid_spec=pltpu.PrefetchScalarGridSpec(
            num_scalar_prefetch=0,
            grid=(nb, N_pad // tn_eff),
            in_specs=[
                pl.BlockSpec((tb_eff, K), lambda i, j: (i, 0)),
                pl.BlockSpec((K, tn_eff), lambda i, j: (0, j)),
            ],
            out_specs=pl.BlockSpec((tb_eff, tn_eff), lambda i, j: (i, j)),
        ),
        compiler_params=pltpu.CompilerParams(
            dimension_semantics=("parallel", "parallel"),
            vmem_limit_bytes=vmem_limit,
        ),
    )(freq_signal, basis_t)
    return jnp.squeeze(out[:B, :N])


if __name__ == "__main__":
    out_dim, in_dim = 128, 128  # module defaults
    key = jax.random.PRNGKey(0)

    basis_t = make_basis_t(out_dim, in_dim)  # (in_dim, out_dim), f32 parameter
    basis = basis_t.T                        # torch-layout (out_dim, in_dim) for the reference

    # Case 1: module-default small batch; bf16 MXU operands + f32 accumulation.
    B = 8
    x = jax.random.normal(key, (B, in_dim), dtype=jnp.float32)
    y = jax.block_until_ready(sin_decoder(x, basis_t))
    ref = (basis[None] @ x[..., None])[..., 0]
    assert y.shape == (B, out_dim)
    np.testing.assert_allclose(np.asarray(y), np.asarray(ref), rtol=2e-2, atol=2e-1)

    # Case 2: same path, full-f32 operands (v5e-friendly), tight tolerance.
    y32 = jax.block_until_ready(sin_decoder(x, basis_t, mxu_dtype=None))
    np.testing.assert_allclose(np.asarray(y32), np.asarray(ref), rtol=1e-5, atol=1e-5)

    # Case 3: ragged larger batch exercising padding + multi-step "parallel" batch grid.
    B2 = 133
    x2 = jax.random.normal(jax.random.PRNGKey(1), (B2, in_dim), dtype=jnp.float32)
    y2 = jax.block_until_ready(sin_decoder(x2, basis_t, mxu_dtype=None))
    ref2 = (basis[None] @ x2[..., None])[..., 0]
    assert y2.shape == (B2, out_dim)
    np.testing.assert_allclose(np.asarray(y2), np.asarray(ref2), rtol=1e-5, atol=1e-5)

    print("KERNEL_OK")
</pallas_src>

<mosaic_0001>
module attributes {stable_mosaic.version = 11 : i64} {
  func.func @_sin_decoder_kernel(%arg0: i32, %arg1: memref<16x128xbf16, #tpu.memory_space<vmem>>, %arg2: memref<128x128xbf16, #tpu.memory_space<vmem>>, %arg3: memref<16x128xf32, #tpu.memory_space<vmem>>) attributes {dimension_semantics = [#tpu.dimension_semantics<parallel>], iteration_bounds = array<i64: 1>, scalar_prefetch = 0 : i64, scratch_operands = 0 : i64, tpu.core_type = #tpu.core_type<tc>, window_params = [{transform_indices = @transform_0, window_bounds = array<i64: 16, 128>}, {pipeline_mode = #tpu.pipeline_mode<synchronous>, transform_indices = @transform_1, window_bounds = array<i64: 128, 128>}, {transform_indices = @transform_2, window_bounds = array<i64: 16, 128>}]} {
    %c0 = arith.constant 0 : index
    %c0_0 = arith.constant 0 : index
    %0 = vector.load %arg1[%c0, %c0_0] : memref<16x128xbf16, #tpu.memory_space<vmem>>, vector<16x128xbf16>
    %c0_1 = arith.constant 0 : index
    %c0_2 = arith.constant 0 : index
    %1 = vector.load %arg2[%c0_1, %c0_2] : memref<128x128xbf16, #tpu.memory_space<vmem>>, vector<128x128xbf16>
    %cst = arith.constant dense<0.000000e+00> : vector<16x128xf32>
    %2 = tpu.matmul %0, %1, %cst {dimension_numbers = #tpu.dot_dimension_numbers<[1], [0], [0], [1], [0, 0, 1, 1], [], []>} : vector<16x128xbf16>, vector<128x128xbf16>, vector<16x128xf32> -> vector<16x128xf32>
    %c0_3 = arith.constant 0 : index
    %c0_4 = arith.constant 0 : index
    %3 = vector.load %arg3[%c0_3, %c0_4] : memref<16x128xf32, #tpu.memory_space<vmem>>, vector<16x128xf32>
    tpu.vector_store %arg3[%c0_3, %c0_4], %2 {strides = array<i32>} : memref<16x128xf32, #tpu.memory_space<vmem>>, vector<16x128xf32>,
    return
  }
  func.func @transform_0(%arg0: i32) -> (i32, i32) {
    %c0_i32 = arith.constant 0 : i32
    %c0_i32_0 = arith.constant 0 : i32
    return %arg0, %c0_i32 : i32, i32
  }
  func.func @transform_1(%arg0: i32) -> (i32, i32) {
    %c0_i32 = arith.constant 0 : i32
    %c0_i32_0 = arith.constant 0 : i32
    %c0_i32_1 = arith.constant 0 : i32
    return %c0_i32, %c0_i32_0 : i32, i32
  }
  func.func @transform_2(%arg0: i32) -> (i32, i32) {
    %c0_i32 = arith.constant 0 : i32
    %c0_i32_0 = arith.constant 0 : i32
    return %arg0, %c0_i32 : i32, i32
  }
}

</mosaic_0001>

<bundles_post_ra>
// kernel: tpu_custom_call.1
= control target key start
LH: loop header
LB: loop body
LE: loop exit
PB: predicated region body
PF: predicated region fallthrough
CT: control target
= control target key end

     0   :  { %7 = vsyncpa [#allocation3], 0  ;;  %s329_s0 = inlined_call_operand.hbm [shape: bf16[16,128], index: 0, kind: input, shape index: {}]   ;;  %s330_s1 = inlined_call_operand.hbm [shape: bf16[128,128], index: 1, kind: input, shape index: {}]   ;;  %s331_s2 = inlined_call_operand.hbm [shape: f32[16,128], index: 2, kind: output, shape index: {}]  }
   0x1   :  { %8 = vsyncpa [#allocation6], 0 }
   0x2   :  { %9 = vsyncpa [#allocation4], 0  ;;  %s296_s9 = smov [#allocation2]  }
   0x3   :  { %s15_s10 = sshll.u32 %s296_s9, 4  ;;  %s16_s10 = int_to_ptr.vmem [resolvable:$true] %s15_s10 }
   0x4   :  { %s238_s11 = scalar_lea.vmem %s16_s10, 128  ;;  %p243_p1 = scmp.lt.s32.totalorder %s16_s10, %s16_s10 }
   0x5   :  { %p239_p0 = scmp.ne.s32.totalorder %s16_s10, %s238_s11  ;;  %p244_p2 = scmp.lt.s32.totalorder %s238_s11, %s238_s11 }
   0x7   :  { %p245_p3 = por %p244_p2, %p243_p1 }
   0x9   :  { %p246_p4 = pnand %p245_p3, %p239_p0 }
   0xb   :  { %249 = shalt.err (!%p246_p4)
}
   0xc   :  { %s297_s12 = smov 64   ;;  %s298_s13 = smov 4  }
   0xd   :  { %21 = dma.hbm_to_vmem [thread:$0]  %s329_s0, 128, %s16_s10, [#allocation3], %s297_s12, %s297_s12, %s298_s13  }
   0xe   :  { %s299_s16 = smov [#allocation5]  }
   0xf   :  { %s27_s17 = sshll.u32 %s299_s16, 4  ;;  %s28_s17 = int_to_ptr.vmem [resolvable:$true] %s27_s17 }
  0x10   :  { %s258_s18 = scalar_lea.vmem %s28_s17, 1024  ;;  %p263_p6 = scmp.lt.s32.totalorder %s28_s17, %s28_s17 }
  0x11   :  { %p259_p5 = scmp.ne.s32.totalorder %s28_s17, %s258_s18  ;;  %p264_p7 = scmp.lt.s32.totalorder %s258_s18, %s258_s18 }
  0x13   :  { %p265_p8 = por %p264_p7, %p263_p6 }
  0x15   :  { %p266_p9 = pnand %p265_p8, %p259_p5 }
  0x17   :  { %269 = shalt.err (!%p266_p9)
}
  0x18   :  { %33 = dma.hbm_to_vmem [thread:$0]  %s330_s1, 1024, %s28_s17, [#allocation6], %s297_s12, %s297_s12, %s298_s13  }
  0x19   :  { %290 = dma.done.wait [#allocation3], 128  }
  0x1a   :  { %291 = vsyncadd [#allocation3], 4294967168 }
  0x1b   :  { %292 = dma.done.wait [#allocation6], 1024  }
  0x1c   :  { %293 = vsyncadd [#allocation6], 4294966272  ;;  %v300_v0 = vmov 0.0   ;;  %vm301_vm0 = vmmov 0   ;;  %v221_v1 = vld [vmem:[#allocation5 + $0x38] sm:$0xff]   ;;  %v222_v2 = vld [vmem:[#allocation5 + $0x30] sm:$0xff]  }
  0x1d   :  { %192 = vmatprep.subr.bf16.mxu0 %v300_v0  ;;  %208 = vmatprep.mubr.msk.bf16.mxu0 %vm301_vm0, %v300_v0  ;;  %v223_v3 = vld [vmem:[#allocation5 + $0x28] sm:$0xff]   ;;  %v224_v4 = vld [vmem:[#allocation5 + $0x20] sm:$0xff]   ;;  %v225_v5 = vld [vmem:[#allocation5 + $0x18] sm:$0xff]   ;;  %s302_s0 = smov [#allocation7]  }
  0x1e   :  { %193 = vmatpush3.bf16.msra.mxu0 %v221_v1  ;;  %v226_v6 = vld [vmem:[#allocation5 + $0x10] sm:$0xff]   ;;  %v227_v7 = vld [vmem:[#allocation5 + $0x8] sm:$0xff]   ;;  %v228_v8 = vld [vmem:[#allocation5] sm:$0xff]   ;;  %s161_s1 = sshll.u32 %s302_s0, 4  ;;  %s162_s1 = int_to_ptr.vmem [resolvable:$true] %s161_s1 }
  0x1f   :  { %194 = vmatprep.subr.bf16.mxu0 %v300_v0  ;;  %v229_v9 = vld [vmem:[#allocation2] sm:$0xff]   ;;  %s270_s21 = scalar_lea.vmem %s162_s1, 256  ;;  %p275_p11 = scmp.lt.s32.totalorder %s162_s1, %s162_s1 }
  0x20   :  { %p271_p10 = scmp.ne.s32.totalorder %s162_s1, %s270_s21  ;;  %p276_p12 = scmp.lt.s32.totalorder %s270_s21, %s270_s21 }
  0x22   :  { %195 = vmatpush3.bf16.msra.mxu0 %v222_v2  ;;  %p277_p13 = por %p276_p12, %p275_p11 }
  0x23   :  { %196 = vmatprep.subr.bf16.mxu0 %v300_v0 }
  0x24   :  { %p278_p0 = pnand %p277_p13, %p271_p10 }
  0x26   :  { %197 = vmatpush3.bf16.msra.mxu0 %v223_v3 }
  0x27   :  { %198 = vmatprep.subr.bf16.mxu0 %v300_v0 }
  0x2a   :  { %199 = vmatpush3.bf16.msra.mxu0 %v224_v4 }
  0x2b   :  { %200 = vmatprep.subr.bf16.mxu0 %v300_v0 }
  0x2e   :  { %201 = vmatpush3.bf16.msra.mxu0 %v225_v5 }
  0x2f   :  { %202 = vmatprep.subr.bf16.mxu0 %v300_v0 }
  0x32   :  { %203 = vmatpush3.bf16.msra.mxu0 %v226_v6 }
  0x33   :  { %204 = vmatprep.subr.bf16.mxu0 %v300_v0 }
  0x36   :  { %205 = vmatpush3.bf16.msra.mxu0 %v227_v7 }
  0x37   :  { %206 = vmatprep.subr.bf16.mxu0 %v300_v0 }
  0x3a   :  { %207 = vmatpush3.bf16.msra.mxu0 %v228_v8 }
  0x3d   :  { %209 = vmatmul.mubr.bf16.vlgmr.msra.gmra.mxu0 %v229_v9 }
  0xfd   :  { %v147_v10 = vpop.f32.mrf.mxu0 }
  0xfe   :  { %154 = vst [vmem:[#allocation7] sm:$0xff] %v147_v10 }
  0xff   :  { %v210_v11 = vpop.f32.mrf.mxu0 }
 0x101   :  { %v150_v12 = vpop.f32.mrf.mxu0 }
 0x102   :  { %155 = vst [vmem:[#allocation7 + $0x8] sm:$0xff] %v150_v12 }
 0x103   :  { %v211_v13 = vpop.f32.mrf.mxu0 }
 0x104   :  { %281 = shalt.err (!%p278_p0)
}
 0x105   :  { %s303_s22 = smov 128   ;;  %s304_s23 = smov 8  }
 0x106   :  { %167 = dma.vmem_to_hbm [thread:$0]  %s162_s1, 256, %s331_s2, [#allocation4], %s303_s22, %s303_s22, %s304_s23  }
 0x107   :  { %294 = dma.done.wait [#allocation4], 256  }
 0x108   :  { %295 = vsyncadd [#allocation4], 4294967040 }
 0x109   :  { %171 = vsyncpa [#allocation3], 1 }
 0x10a   :  { %172 = vsyncpa [#allocation6], 1 }
 0x10b   :  { %173 = vsyncpa [#allocation4], 1 }

</bundles_post_ra>
